<compile_context>
chip_gen: v6e
topology: v6e:2x2x1
jax: 0.10.0
libtpu: 0.0.40
codegen_flags: <defaults>
</compile_context>

<pallas_src>
import jax
import jax.numpy as jnp
from jax.experimental import pallas as pl
from jax.experimental.pallas import tpu as pltpu


def _ltr_kernel(x_log_ref, x_len_ref, w_log_ref, w_len_ref, o_ref):
    # x_*  : [TB, K] activation tile for this grid step
    # w_*  : [1, K]  effective (W_comb-folded) weights, VMEM-resident across steps
    x_log = x_log_ref[...].astype(jnp.float32)
    x_len = x_len_ref[...].astype(jnp.float32)
    w_log = w_log_ref[...].astype(jnp.float32)   # broadcasts over batch rows
    w_len = w_len_ref[...].astype(jnp.float32)

    # Fused VPU multiply-add, single XLU reduce over the kernel axis.
    # (K=32, N=1 -> MXU would be <1% utilized; VPU+XLU hides under the DMA.)
    acc = x_log * w_log + x_len * w_len                     # [TB, K]
    o_ref[...] = jnp.sum(acc, axis=-1, keepdims=True).astype(o_ref.dtype)  # [TB, 1]


def learning_to_rank(log_normed, length_normed, w_log, w_len, w_comb, *, tb=2048):
    """Forward pass of LearningToRankLayer as a batch-tiled Pallas kernel.

    tb: batch tile size.  2048 keeps the pipelined VMEM footprint
        (2 inputs x 2 buffers x TB x 128 padded lanes x 4B ~= 4 MiB) well under
        the scoped-VMEM default on every generation (16 MiB v5e / 32 MiB
        v6e+v7x) while amortizing per-step overhead.
    """
    B, K = log_normed.shape
    assert length_normed.shape == (B, K)
    assert w_log.shape == (1, K) and w_len.shape == (1, K) and w_comb.shape == (1, 2)
    assert tb % 8 == 0

    # Fold dense_comb into the per-kernel weights (exact same math: everything
    # is linear and bias-free).  Removes the second-stage combine and the
    # [1,2] DMA entirely.
    w_eff_log = (w_log * w_comb[:, 0:1]).astype(jnp.float32)
    w_eff_len = (w_len * w_comb[:, 1:2]).astype(jnp.float32)

    out_dtype = log_normed.dtype  # match the input dtype (PyTorch behaviour)

    # Tile the batch.  If B fits in one tile, use the full dim (satisfies the
    # (8,128) rule by "equal the full array dims"); otherwise use tb (multiple
    # of 8) and let Pallas mask the ragged final block.
    TB = B if B <= tb else tb
    nb = pl.cdiv(B, TB)

    itemsize = jnp.dtype(log_normed.dtype).itemsize
    cost = pl.CostEstimate(
        flops=4 * B * K,                 # 2 muls + 1 add + reduce-add per element
        transcendentals=0,
        bytes_accessed=2 * B * K * itemsize + B * itemsize + 2 * K * 4,
    )

    return pl.pallas_call(
        _ltr_kernel,
        out_shape=jax.ShapeDtypeStruct((B, 1), out_dtype),
        grid=(nb,),
        in_specs=[
            pl.BlockSpec((TB, K), lambda i: (i, 0)),   # log_normed tile
            pl.BlockSpec((TB, K), lambda i: (i, 0)),   # length_normed tile
            pl.BlockSpec((1, K), lambda i: (0, 0)),    # W_eff_log (resident)
            pl.BlockSpec((1, K), lambda i: (0, 0)),    # W_eff_len (resident)
        ],
        out_specs=pl.BlockSpec((TB, 1), lambda i: (i, 0)),
        compiler_params=pltpu.CompilerParams(
            dimension_semantics=("parallel",),  # megacore sharding on v7x; no-op v5e/v6e
        ),
        cost_estimate=cost,
    )(log_normed, length_normed, w_eff_log, w_eff_len)


def init_params(key, n_kernels):
    k1, k2, k3 = jax.random.split(key, 3)
    # torch.nn.init.uniform_(w, -0.014, 0.014)
    w_log = jax.random.uniform(k1, (1, n_kernels), jnp.float32, -0.014, 0.014)
    w_len = jax.random.uniform(k2, (1, n_kernels), jnp.float32, -0.014, 0.014)
    # nn.Linear(2, 1) default init: U(-1/sqrt(in_features), 1/sqrt(in_features))
    bound = 1.0 / jnp.sqrt(2.0)
    w_comb = jax.random.uniform(k3, (1, 2), jnp.float32, -bound, bound)
    return w_log, w_len, w_comb


if __name__ == "__main__":
    key = jax.random.PRNGKey(0)
    B, n_kernels = 8, 32

    k_in1, k_in2, k_params = jax.random.split(key, 3)
    log_normed = jax.random.normal(k_in1, (B, n_kernels), jnp.float32)
    length_normed = jax.random.normal(k_in2, (B, n_kernels), jnp.float32)
    w_log, w_len, w_comb = init_params(k_params, n_kernels)

    out = learning_to_rank(log_normed, length_normed, w_log, w_len, w_comb)
    out = jax.block_until_ready(out)

    # Pure-JAX reference (mirrors the PyTorch forward exactly).
    s_log_ref = log_normed @ w_log.T
    s_len_ref = length_normed @ w_len.T
    ref = jnp.concatenate([s_log_ref, s_len_ref], axis=1) @ w_comb.T

    assert out.shape == (B, 1)
    assert out.dtype == log_normed.dtype
    assert jnp.allclose(out, ref, atol=1e-5, rtol=1e-5), (out, ref)
    print("KERNEL_OK")
</pallas_src>

<mosaic_0001>
module attributes {stable_mosaic.version = 11 : i64} {
  func.func @_ltr_kernel(%arg0: i32, %arg1: memref<8x32xf32, #tpu.memory_space<vmem>>, %arg2: memref<8x32xf32, #tpu.memory_space<vmem>>, %arg3: memref<1x32xf32, #tpu.memory_space<vmem>>, %arg4: memref<1x32xf32, #tpu.memory_space<vmem>>, %arg5: memref<8x1xf32, #tpu.memory_space<vmem>>) attributes {dimension_semantics = [#tpu.dimension_semantics<parallel>], iteration_bounds = array<i64: 1>, scalar_prefetch = 0 : i64, scratch_operands = 0 : i64, tpu.core_type = #tpu.core_type<tc>, window_params = [{transform_indices = @transform_0, window_bounds = array<i64: 8, 32>}, {transform_indices = @transform_1, window_bounds = array<i64: 8, 32>}, {pipeline_mode = #tpu.pipeline_mode<synchronous>, transform_indices = @transform_2, window_bounds = array<i64: 1, 32>}, {pipeline_mode = #tpu.pipeline_mode<synchronous>, transform_indices = @transform_3, window_bounds = array<i64: 1, 32>}, {transform_indices = @transform_4, window_bounds = array<i64: 8, 1>}]} {
    %c0 = arith.constant 0 : index
    %c0_0 = arith.constant 0 : index
    %0 = vector.load %arg1[%c0, %c0_0] : memref<8x32xf32, #tpu.memory_space<vmem>>, vector<8x32xf32>
    %c0_1 = arith.constant 0 : index
    %c0_2 = arith.constant 0 : index
    %1 = vector.load %arg2[%c0_1, %c0_2] : memref<8x32xf32, #tpu.memory_space<vmem>>, vector<8x32xf32>
    %c0_3 = arith.constant 0 : index
    %c0_4 = arith.constant 0 : index
    %2 = vector.load %arg3[%c0_3, %c0_4] : memref<1x32xf32, #tpu.memory_space<vmem>>, vector<1x32xf32>
    %c0_5 = arith.constant 0 : index
    %c0_6 = arith.constant 0 : index
    %3 = vector.load %arg4[%c0_5, %c0_6] : memref<1x32xf32, #tpu.memory_space<vmem>>, vector<1x32xf32>
    %4 = vector.broadcast %2 : vector<1x32xf32> to vector<8x32xf32>
    %5 = arith.mulf %0, %4 : vector<8x32xf32>
    %6 = vector.broadcast %3 : vector<1x32xf32> to vector<8x32xf32>
    %7 = arith.mulf %1, %6 : vector<8x32xf32>
    %8 = arith.addf %5, %7 : vector<8x32xf32>
    %cst = arith.constant dense<0.000000e+00> : vector<8xf32>
    %9 = vector.multi_reduction <add>, %8, %cst [1] : vector<8x32xf32> to vector<8xf32>
    %10 = vector.shape_cast %9 : vector<8xf32> to vector<8x1xf32>
    %c0_7 = arith.constant 0 : index
    %c0_8 = arith.constant 0 : index
    %11 = vector.load %arg5[%c0_7, %c0_8] : memref<8x1xf32, #tpu.memory_space<vmem>>, vector<8x1xf32>
    tpu.vector_store %arg5[%c0_7, %c0_8], %10 {strides = array<i32>} : memref<8x1xf32, #tpu.memory_space<vmem>>, vector<8x1xf32>,
    return
  }
  func.func @transform_0(%arg0: i32) -> (i32, i32) {
    %c0_i32 = arith.constant 0 : i32
    %c0_i32_0 = arith.constant 0 : i32
    return %arg0, %c0_i32 : i32, i32
  }
  func.func @transform_1(%arg0: i32) -> (i32, i32) {
    %c0_i32 = arith.constant 0 : i32
    %c0_i32_0 = arith.constant 0 : i32
    return %arg0, %c0_i32 : i32, i32
  }
  func.func @transform_2(%arg0: i32) -> (i32, i32) {
    %c0_i32 = arith.constant 0 : i32
    %c0_i32_0 = arith.constant 0 : i32
    %c0_i32_1 = arith.constant 0 : i32
    return %c0_i32, %c0_i32_0 : i32, i32
  }
  func.func @transform_3(%arg0: i32) -> (i32, i32) {
    %c0_i32 = arith.constant 0 : i32
    %c0_i32_0 = arith.constant 0 : i32
    %c0_i32_1 = arith.constant 0 : i32
    return %c0_i32, %c0_i32_0 : i32, i32
  }
  func.func @transform_4(%arg0: i32) -> (i32, i32) {
    %c0_i32 = arith.constant 0 : i32
    %c0_i32_0 = arith.constant 0 : i32
    return %arg0, %c0_i32 : i32, i32
  }
}

</mosaic_0001>

<bundles_post_ra>
// kernel: tpu_custom_call.1
= control target key start
LH: loop header
LB: loop body
LE: loop exit
PB: predicated region body
PF: predicated region fallthrough
CT: control target
= control target key end

     0   :  { %9 = vsyncpa [#allocation3], 0  ;;  %s162_s0 = inlined_call_operand.hbm [shape: f32[8,32], index: 0, kind: input, shape index: {}]   ;;  %s163_s1 = inlined_call_operand.hbm [shape: f32[8,32], index: 1, kind: input, shape index: {}]   ;;  %s164_s2 = inlined_call_operand.vmem [shape: f32[1,32], index: 2, kind: input, shape index: {}]   ;;  %s165_s3 = inlined_call_operand.vmem [shape: f32[1,32], index: 3, kind: input, shape index: {}]   ;;  %s166_s4 = inlined_call_operand.vmem [shape: f32[8,1], index: 4, kind: output, shape index: {}]  }
   0x1   :  { %10 = vsyncpa [#allocation5], 0  ;;  %s120_s15 = smov [#allocation2]   ;;  %s121_s17 = smov [#allocation4]  }
   0x2   :  { %s17_s16 = sshll.u32 %s120_s15, 4  ;;  %s27_s18 = sshll.u32 %s121_s17, 4  ;;  %s18_s16 = int_to_ptr.vmem [resolvable:$true] %s17_s16  ;;  %s28_s18 = int_to_ptr.vmem [resolvable:$true] %s27_s18 }
   0x3   :  { %s84_s19 = scalar_lea.vmem %s18_s16, 128  ;;  %p89_p1 = scmp.lt.s32.totalorder %s18_s16, %s18_s16 }
   0x4   :  { %p85_p0 = scmp.ne.s32.totalorder %s18_s16, %s84_s19  ;;  %p90_p2 = scmp.lt.s32.totalorder %s84_s19, %s84_s19 }
   0x6   :  { %p91_p3 = por %p90_p2, %p89_p1 }
   0x8   :  { %p92_p4 = pnand %p91_p3, %p85_p0 }
   0xa   :  { %95 = shalt.err (!%p92_p4)
}
   0xb   :  { %20 = dma.hbm_to_vmem [thread:$0]  %s162_s0, 128, %s18_s16, [#allocation3]  }
   0xc   :  { %s104_s22 = scalar_lea.vmem %s28_s18, 128  ;;  %p109_p6 = scmp.lt.s32.totalorder %s28_s18, %s28_s18 }
   0xd   :  { %p105_p5 = scmp.ne.s32.totalorder %s28_s18, %s104_s22  ;;  %p110_p7 = scmp.lt.s32.totalorder %s104_s22, %s104_s22 }
   0xf   :  { %p111_p8 = por %p110_p7, %p109_p6 }
  0x11   :  { %p112_p9 = pnand %p111_p8, %p105_p5 }
  0x13   :  { %115 = shalt.err (!%p112_p9)
}
  0x14   :  { %30 = dma.hbm_to_vmem [thread:$0]  %s163_s1, 128, %s28_s18, [#allocation5]  }
  0x15   :  { %116 = dma.done.wait [#allocation3], 128  }
  0x16   :  { %117 = vsyncadd [#allocation3], 4294967168 }
  0x17   :  { %118 = dma.done.wait [#allocation5], 128  }
  0x18   :  { %119 = vsyncadd [#allocation5], 4294967168  ;;  %v41_v0 = vld [vmem:[#allocation2] sm:$0xff]  ;;  %v42_v1 = vld [vmem:[#allocation4] sm:$0xff]  ;;  %vm60_vm0 = vcmask 261120   ;;  %vm64_vm1 = vcmask 7168  }
  0x19   :  { %v72_v2 = vld [vmem:[%s164_s2] ss:$0 sm:$0xff] }
  0x1a   :  { %v73_v3 = vld [vmem:[%s165_s3] ss:$0 sm:$0xff]  ;;  %v51_v4 = vmul.f32 %v72_v2, %v41_v0 }
  0x1b   :  { %v58_v5 = vmul.f32 %v73_v3, %v42_v1 }
  0x1d   :  { %v59_v6 = vadd.f32 %v58_v5, %v51_v4 }
  0x1f   :  { %v61_v7 = vsel %vm60_vm0, %v59_v6, 0.0 }
  0x20   :  { %62 = vadd.xlane.f32.xlu0 %v61_v7 }
  0xa9   :  { %v63_v8 = vpop.xlane.xlu0 %62 }
  0xaa   :  { %65 = vst.msk [vmem:[%s166_s4] sm:$0xff] %vm64_vm1, %v63_v8 }
  0xab   :  { %70 = vsyncpa [#allocation3], 1 }
  0xac   :  { %71 = vsyncpa [#allocation5], 1 }

</bundles_post_ra>
